<compile_context>
chip_gen: v7x
topology: tpu7x:2x2x1
jax: 0.10.0
libtpu: 0.0.40
codegen_flags: <defaults>
</compile_context>

<pallas_src>
import functools

import jax
import jax.numpy as jnp
from jax.experimental import pallas as pl
from jax.experimental.pallas import tpu as pltpu


def _spatial_transformer_kernel(src_ref, flow_ref, base_ref, out_ref, *,
                                H, W, C, T, CC, matmul_dtype):
    """One (batch, pixel-tile) grid step.

    src_ref:  (1, C*H, W)  matmul_dtype -- invariant along the pixel-tile axis
    flow_ref: (1, 2, T)                 -- (row, col) displacement per pixel
    base_ref: (2, T)       float32      -- base (row, col) pixel coordinates
    out_ref:  (1, C, T)    src dtype
    """
    # Sample coordinates.  The PyTorch module's normalization to [-1, 1]
    # followed by grid_sample's (align_corners=True) de-normalization is the
    # identity, so it is dropped.
    r = base_ref[0:1, :] + flow_ref[0, 0:1, :].astype(jnp.float32)    # (1, T)
    c = base_ref[1:2, :] + flow_ref[0, 1:2, :].astype(jnp.float32)    # (1, T)

    r0 = jnp.floor(r)
    c0 = jnp.floor(c)
    wr1 = r - r0
    wr0 = 1.0 - wr1
    wc1 = c - c0
    wc0 = 1.0 - wc1
    r0i = r0.astype(jnp.int32)
    c0i = c0.astype(jnp.int32)
    r1i = r0i + 1
    c1i = c0i + 1

    # Separable 2-tap one-hot weight matrices.  Out-of-range corner indices
    # match no iota row, so they contribute exactly zero (== zeros padding).
    iota_w = jax.lax.broadcasted_iota(jnp.int32, (W, T), 0)
    b_mat = (jnp.where(iota_w == c0i, wc0, 0.0)
             + jnp.where(iota_w == c1i, wc1, 0.0))           # (W, T) f32
    b_mm = b_mat.astype(matmul_dtype)                        # MXU operand

    iota_h = jax.lax.broadcasted_iota(jnp.int32, (H, T), 0)
    a_mat = (jnp.where(iota_h == r0i, wr0, 0.0)
             + jnp.where(iota_h == r1i, wr1, 0.0))           # (H, T) f32 (VPU)

    # Stage 1 (MXU, matmul_dtype in / f32 accumulate): contract W per channel
    # chunk so the f32 intermediate stays bounded at CC*H*T*4 bytes.
    # Stage 2 (VPU, f32): contract H with the per-pixel row weights.
    for g in range(C // CC):
        src_chunk = src_ref[0, pl.ds(g * CC * H, CC * H), :]           # (CC*H, W)
        tmp = jnp.dot(src_chunk, b_mm,
                      preferred_element_type=jnp.float32)              # (CC*H, T)
        if CC == 1:
            res = jnp.sum(tmp * a_mat, axis=0, keepdims=True)          # (1, T)
        else:
            # Pure view: CC > 1 is only chosen when H % 8 == 0.
            res = jnp.sum(tmp.reshape(CC, H, T) * a_mat[None, :, :],
                          axis=1)                                       # (CC, T)
        out_ref[0, pl.ds(g * CC, CC), :] = res.astype(out_ref.dtype)


def _vmem_capacity_bytes():
    """Physical VMEM of the local TPU generation; conservative fallback."""
    try:
        return int(pltpu.get_tpu_info().vmem_capacity_bytes)
    except Exception:
        return 64 * 1024 * 1024    # assume the smallest (v7x per-TensorCore)


def _pick_hw_tile(HW, max_tile):
    """Largest multiple-of-128 divisor of HW that is <= max_tile (lane-dense,
    unmasked output stores).  Falls back to a single full-HW block."""
    if HW % 128 != 0:
        return HW
    t = max(128, (min(max_tile, HW) // 128) * 128)
    while HW % t != 0:
        t -= 128
    return t


def spatial_transformer(src, flow, mode="bilinear", *, max_hw_tile=None,
                        matmul_dtype=jnp.bfloat16,
                        tmp_budget_bytes=2 * 1024 * 1024):
    """JAX/Pallas equivalent of SpatialTransformer.forward (2-D, bilinear).

    matmul_dtype=bfloat16 (default) feeds the MXU bf16 with f32 accumulation;
    expect ~1e-2-level absolute error vs the fp32 reference.  Pass
    matmul_dtype=float32 for near-exact parity with PyTorch fp32.
    """
    # TODO(synk): only the 2-D bilinear branch is implemented ('nearest' and
    # the 3-D branch of the PyTorch module are not).
    assert mode == "bilinear"
    N, C, H, W = src.shape
    assert flow.shape == (N, 2, H, W)
    assert H > 1 and W > 1, "module divides by (size - 1)"
    HW = H * W

    mm_isz = jnp.dtype(matmul_dtype).itemsize
    out_isz = jnp.dtype(src.dtype).itemsize

    # ---- Generation-aware VMEM budget and pixel-tile size T -----------------
    vmem_limit = min(int(_vmem_capacity_bytes() * 3 // 4), 112 * 1024 * 1024)
    src_resident = 2 * C * H * W * mm_isz           # pipeline holds two buffers
    avail = max(vmem_limit - src_resident - tmp_budget_bytes - (2 << 20),
                1 << 20)
    per_pix = (2 * (2 * 4 + 2 * 4 + C * out_isz)    # flow + base + out (x2 bufs)
               + 2 * (H + W) * 4                    # A/B one-hots + temporaries
               + W * mm_isz                         # matmul-dtype copy of B
               + H * 4)                             # minimum stage-1 accumulator
    t_cap = max(avail // per_pix, 128)
    if max_hw_tile is None:
        max_hw_tile = 4096
    T = _pick_hw_tile(HW, min(max_hw_tile, t_cap))
    num_t = HW // T

    # Channel-chunk size for the bounded stage-1 intermediate (f32, CC*H*T).
    CC = 1
    if H % 8 == 0:                                   # reshape stays a pure view
        for d in range(C, 0, -1):
            if C % d == 0 and d * H * T * 4 <= tmp_budget_bytes:
                CC = d
                break

    # Free row-major reshape (no transpose) + single wrapper-side cast.
    src_chw = src.reshape(N, C * H, W).astype(matmul_dtype)
    flow_f = flow.reshape(N, 2, HW)
    # Tiny precomputed base grid -> no in-kernel integer divide/mod.
    row_base = jnp.broadcast_to(
        jnp.arange(H, dtype=jnp.float32)[:, None], (H, W)).reshape(HW)
    col_base = jnp.broadcast_to(
        jnp.arange(W, dtype=jnp.float32)[None, :], (H, W)).reshape(HW)
    base = jnp.stack([row_base, col_base], axis=0)   # (2, HW)

    kernel = functools.partial(_spatial_transformer_kernel, H=H, W=W, C=C,
                               T=T, CC=CC, matmul_dtype=matmul_dtype)

    out = pl.pallas_call(
        kernel,
        out_shape=jax.ShapeDtypeStruct((N, C, HW), src.dtype),
        grid_spec=pltpu.PrefetchScalarGridSpec(
            num_scalar_prefetch=0,
            grid=(N, num_t),
            in_specs=[
                # src block is invariant along the pixel-tile axis: stays
                # resident, no re-DMA when only t changes.
                pl.BlockSpec((1, C * H, W), lambda b, t: (b, 0, 0)),
                pl.BlockSpec((1, 2, T), lambda b, t: (b, 0, t)),
                pl.BlockSpec((2, T), lambda b, t: (0, t)),
            ],
            out_specs=pl.BlockSpec((1, C, T), lambda b, t: (b, 0, t)),
        ),
        compiler_params=pltpu.CompilerParams(
            # Both axes parallel: v7x megacore can split num_t when N == 1.
            dimension_semantics=("parallel", "parallel"),
            vmem_limit_bytes=vmem_limit,
        ),
    )(src_chw, flow_f, base)

    return out.reshape(N, C, H, W)


def _bilinear_reference(src, flow):
    """Pure-JAX reference: bilinear warp, align_corners=True, zeros padding."""
    N, C, H, W = src.shape
    rows = jnp.arange(H, dtype=jnp.float32)[None, :, None]    # (1, H, 1)
    cols = jnp.arange(W, dtype=jnp.float32)[None, None, :]    # (1, 1, W)
    r = rows + flow[:, 0]                                      # (N, H, W)
    c = cols + flow[:, 1]
    r0 = jnp.floor(r)
    c0 = jnp.floor(c)
    wr1 = r - r0
    wr0 = 1.0 - wr1
    wc1 = c - c0
    wc0 = 1.0 - wc1
    r0i = r0.astype(jnp.int32)
    c0i = c0.astype(jnp.int32)
    r1i = r0i + 1
    c1i = c0i + 1
    n_idx = jnp.arange(N)[:, None, None, None]
    c_idx = jnp.arange(C)[None, :, None, None]

    def corner(ri, ci, w):
        valid = (ri >= 0) & (ri < H) & (ci >= 0) & (ci < W)    # (N, H, W)
        ric = jnp.clip(ri, 0, H - 1)[:, None]                  # (N, 1, H, W)
        cic = jnp.clip(ci, 0, W - 1)[:, None]
        vals = src[n_idx, c_idx, ric, cic]                     # (N, C, H, W)
        return jnp.where(valid[:, None], w[:, None] * vals, 0.0)

    return (corner(r0i, c0i, wr0 * wc0) + corner(r0i, c1i, wr0 * wc1)
            + corner(r1i, c0i, wr1 * wc0) + corner(r1i, c1i, wr1 * wc1))


if __name__ == "__main__":
    key = jax.random.PRNGKey(0)

    def run_case(N, C, H, W, max_hw_tile=None,
                 tmp_budget_bytes=2 * 1024 * 1024):
        k_src, k_flow = jax.random.split(jax.random.fold_in(key, H * W + C))
        src = jax.random.normal(k_src, (N, C, H, W), dtype=jnp.float32)
        flow = 2.0 * jax.random.normal(k_flow, (N, 2, H, W), dtype=jnp.float32)
        ref = _bilinear_reference(src, flow)

        # f32 MXU path: near-exact parity with the fp32 reference.
        out_f32 = spatial_transformer(src, flow, matmul_dtype=jnp.float32,
                                      max_hw_tile=max_hw_tile,
                                      tmp_budget_bytes=tmp_budget_bytes)
        jax.block_until_ready(out_f32)
        assert out_f32.shape == (N, C, H, W)
        err = float(jnp.max(jnp.abs(out_f32 - ref)))
        assert err < 1e-4, f"f32 path mismatch vs reference: {err}"

        # Identity flow must reproduce the source (one-hot weights are 1/0).
        out_id = spatial_transformer(src, jnp.zeros_like(flow),
                                     matmul_dtype=jnp.float32,
                                     max_hw_tile=max_hw_tile,
                                     tmp_budget_bytes=tmp_budget_bytes)
        jax.block_until_ready(out_id)
        assert float(jnp.max(jnp.abs(out_id - src))) < 1e-4, "identity check"

        # Default path: bf16 MXU inputs (src + column weights), f32 accumulate.
        out_bf16 = spatial_transformer(src, flow, max_hw_tile=max_hw_tile,
                                       tmp_budget_bytes=tmp_budget_bytes)
        jax.block_until_ready(out_bf16)
        assert bool(jnp.all(jnp.isfinite(out_bf16)))
        err = float(jnp.max(jnp.abs(out_bf16 - ref)))
        assert err < 5e-2, f"bf16 path mismatch vs reference: {err}"

    # Single-tile path (T == HW == 256), whole-C stage-1 matmul (CC == C).
    run_case(2, 4, 16, 16)
    # Multi-tile path: HW = 1024 split into 4 lane-dense tiles of 256.
    run_case(2, 4, 32, 32, max_hw_tile=256)
    # Channel-chunked stage 1 (CC == 2): tiny tmp budget forces two chunks.
    run_case(1, 4, 32, 32, max_hw_tile=256, tmp_budget_bytes=64 * 1024)

    print("KERNEL_OK")
</pallas_src>

<mosaic_0001>
module attributes {stable_mosaic.version = 11 : i64} {
  func.func @_spatial_transformer_kernel(%arg0: i32, %arg1: i32, %arg2: memref<1x64x16xf32, #tpu.memory_space<vmem>>, %arg3: memref<1x2x256xf32, #tpu.memory_space<vmem>>, %arg4: memref<2x256xf32, #tpu.memory_space<vmem>>, %arg5: memref<1x4x256xf32, #tpu.memory_space<vmem>>) attributes {dimension_semantics = [#tpu.dimension_semantics<parallel>, #tpu.dimension_semantics<parallel>], iteration_bounds = array<i64: 2, 1>, scalar_prefetch = 0 : i64, scratch_operands = 0 : i64, tpu.core_type = #tpu.core_type<tc>, window_params = [{transform_indices = @transform_0, window_bounds = array<i64: 1, 64, 16>}, {transform_indices = @transform_1, window_bounds = array<i64: 1, 2, 256>}, {transform_indices = @transform_2, window_bounds = array<i64: 2, 256>}, {transform_indices = @transform_3, window_bounds = array<i64: 1, 4, 256>}]} {
    %c0 = arith.constant 0 : index
    %c0_0 = arith.constant 0 : index
    %0 = vector.load %arg4[%c0, %c0_0] : memref<2x256xf32, #tpu.memory_space<vmem>>, vector<1x256xf32>
    %c0_1 = arith.constant 0 : index
    %c0_2 = arith.constant 0 : index
    %c0_3 = arith.constant 0 : index
    %1 = vector.load %arg3[%c0_1, %c0_2, %c0_3] : memref<1x2x256xf32, #tpu.memory_space<vmem>>, vector<1x1x256xf32>
    %2 = vector.shape_cast %1 : vector<1x1x256xf32> to vector<1x256xf32>
    %3 = arith.addf %0, %2 : vector<1x256xf32>
    %c1 = arith.constant 1 : index
    %c0_4 = arith.constant 0 : index
    %4 = vector.load %arg4[%c1, %c0_4] : memref<2x256xf32, #tpu.memory_space<vmem>>, vector<1x256xf32>
    %c0_5 = arith.constant 0 : index
    %c1_6 = arith.constant 1 : index
    %c0_7 = arith.constant 0 : index
    %5 = vector.load %arg3[%c0_5, %c1_6, %c0_7] : memref<1x2x256xf32, #tpu.memory_space<vmem>>, vector<1x1x256xf32>
    %6 = vector.shape_cast %5 : vector<1x1x256xf32> to vector<1x256xf32>
    %7 = arith.addf %4, %6 : vector<1x256xf32>
    %8 = math.floor %3 : vector<1x256xf32>
    %9 = math.floor %7 : vector<1x256xf32>
    %10 = arith.subf %3, %8 : vector<1x256xf32>
    %cst = arith.constant 1.000000e+00 : f32
    %11 = vector.broadcast %cst : f32 to vector<1x256xf32>
    %12 = arith.subf %11, %10 : vector<1x256xf32>
    %13 = arith.subf %7, %9 : vector<1x256xf32>
    %cst_8 = arith.constant 1.000000e+00 : f32
    %14 = vector.broadcast %cst_8 : f32 to vector<1x256xf32>
    %15 = arith.subf %14, %13 : vector<1x256xf32>
    %16 = arith.fptosi %8 : vector<1x256xf32> to vector<1x256xi32>
    %17 = arith.fptosi %9 : vector<1x256xf32> to vector<1x256xi32>
    %c1_i32 = arith.constant 1 : i32
    %18 = vector.broadcast %c1_i32 : i32 to vector<1x256xi32>
    %19 = arith.addi %16, %18 : vector<1x256xi32>
    %c1_i32_9 = arith.constant 1 : i32
    %20 = vector.broadcast %c1_i32_9 : i32 to vector<1x256xi32>
    %21 = arith.addi %17, %20 : vector<1x256xi32>
    %22 = tpu.iota {dimensions = array<i32: 0>} : vector<16x256xi32>
    %23 = vector.broadcast %17 : vector<1x256xi32> to vector<16x256xi32>
    %24 = arith.cmpi eq, %22, %23 : vector<16x256xi32>
    %cst_10 = arith.constant 0.000000e+00 : f32
    %25 = vector.shape_cast %15 : vector<1x256xf32> to vector<1x256xf32>
    %26 = vector.broadcast %25 : vector<1x256xf32> to vector<16x256xf32>
    %27 = vector.broadcast %cst_10 : f32 to vector<16x256xf32>
    %28 = arith.select %24, %26, %27 : vector<16x256xi1>, vector<16x256xf32>
    %29 = vector.broadcast %21 : vector<1x256xi32> to vector<16x256xi32>
    %30 = arith.cmpi eq, %22, %29 : vector<16x256xi32>
    %cst_11 = arith.constant 0.000000e+00 : f32
    %31 = vector.shape_cast %13 : vector<1x256xf32> to vector<1x256xf32>
    %32 = vector.broadcast %31 : vector<1x256xf32> to vector<16x256xf32>
    %33 = vector.broadcast %cst_11 : f32 to vector<16x256xf32>
    %34 = arith.select %30, %32, %33 : vector<16x256xi1>, vector<16x256xf32>
    %35 = arith.addf %28, %34 : vector<16x256xf32>
    %36 = tpu.iota {dimensions = array<i32: 0>} : vector<16x256xi32>
    %37 = vector.broadcast %16 : vector<1x256xi32> to vector<16x256xi32>
    %38 = arith.cmpi eq, %36, %37 : vector<16x256xi32>
    %cst_12 = arith.constant 0.000000e+00 : f32
    %39 = vector.shape_cast %12 : vector<1x256xf32> to vector<1x256xf32>
    %40 = vector.broadcast %39 : vector<1x256xf32> to vector<16x256xf32>
    %41 = vector.broadcast %cst_12 : f32 to vector<16x256xf32>
    %42 = arith.select %38, %40, %41 : vector<16x256xi1>, vector<16x256xf32>
    %43 = vector.broadcast %19 : vector<1x256xi32> to vector<16x256xi32>
    %44 = arith.cmpi eq, %36, %43 : vector<16x256xi32>
    %cst_13 = arith.constant 0.000000e+00 : f32
    %45 = vector.shape_cast %10 : vector<1x256xf32> to vector<1x256xf32>
    %46 = vector.broadcast %45 : vector<1x256xf32> to vector<16x256xf32>
    %47 = vector.broadcast %cst_13 : f32 to vector<16x256xf32>
    %48 = arith.select %44, %46, %47 : vector<16x256xi1>, vector<16x256xf32>
    %49 = arith.addf %42, %48 : vector<16x256xf32>
    %c0_14 = arith.constant 0 : index
    %c0_15 = arith.constant 0 : index
    %c0_16 = arith.constant 0 : index
    %50 = vector.load %arg2[%c0_14, %c0_15, %c0_16] : memref<1x64x16xf32, #tpu.memory_space<vmem>>, vector<1x64x16xf32>
    %51 = vector.shape_cast %50 : vector<1x64x16xf32> to vector<64x16xf32>
    %cst_17 = arith.constant dense<0.000000e+00> : vector<64x256xf32>
    %52 = tpu.matmul %51, %35, %cst_17 {dimension_numbers = #tpu.dot_dimension_numbers<[1], [0], [0], [1], [0, 0, 1, 1], [], []>} : vector<64x16xf32>, vector<16x256xf32>, vector<64x256xf32> -> vector<64x256xf32>
    %53 = vector.shape_cast %52 : vector<64x256xf32> to vector<4x16x256xf32>
    %54 = vector.shape_cast %49 : vector<16x256xf32> to vector<1x16x256xf32>
    %55 = vector.broadcast %54 : vector<1x16x256xf32> to vector<4x16x256xf32>
    %56 = arith.mulf %53, %55 : vector<4x16x256xf32>
    %cst_18 = arith.constant dense<0.000000e+00> : vector<4x256xf32>
    %57 = vector.multi_reduction <add>, %56, %cst_18 [1] : vector<4x16x256xf32> to vector<4x256xf32>
    %c0_19 = arith.constant 0 : index
    %c0_20 = arith.constant 0 : index
    %c0_21 = arith.constant 0 : index
    %58 = vector.load %arg5[%c0_19, %c0_20, %c0_21] : memref<1x4x256xf32, #tpu.memory_space<vmem>>, vector<1x4x256xf32>
    %59 = vector.shape_cast %58 : vector<1x4x256xf32> to vector<4x256xf32>
    %60 = vector.shape_cast %57 : vector<4x256xf32> to vector<1x4x256xf32>
    tpu.vector_store %arg5[%c0_19, %c0_20, %c0_21], %60 {strides = array<i32>} : memref<1x4x256xf32, #tpu.memory_space<vmem>>, vector<1x4x256xf32>,
    return
  }
  func.func @transform_0(%arg0: i32, %arg1: i32) -> (i32, i32, i32) {
    %c0_i32 = arith.constant 0 : i32
    %c0_i32_0 = arith.constant 0 : i32
    %c0_i32_1 = arith.constant 0 : i32
    return %arg0, %c0_i32, %c0_i32_0 : i32, i32, i32
  }
  func.func @transform_1(%arg0: i32, %arg1: i32) -> (i32, i32, i32) {
    %c0_i32 = arith.constant 0 : i32
    %c0_i32_0 = arith.constant 0 : i32
    return %arg0, %c0_i32, %arg1 : i32, i32, i32
  }
  func.func @transform_2(%arg0: i32, %arg1: i32) -> (i32, i32) {
    %c0_i32 = arith.constant 0 : i32
    %c0_i32_0 = arith.constant 0 : i32
    return %c0_i32, %arg1 : i32, i32
  }
  func.func @transform_3(%arg0: i32, %arg1: i32) -> (i32, i32, i32) {
    %c0_i32 = arith.constant 0 : i32
    %c0_i32_0 = arith.constant 0 : i32
    return %arg0, %c0_i32, %arg1 : i32, i32, i32
  }
}

</mosaic_0001>

<bundles_post_ra>
// kernel: tpu_custom_call.1
= control target key start
LH: loop header
LB: loop body
LE: loop exit
PB: predicated region body
PF: predicated region fallthrough
CT: control target
= control target key end

     0   :  { %8 = vsyncpa [#allocation3], 0  ;;  %s1149_s0 = inlined_call_operand.vmem [shape: f32[2,64,16], index: 0, kind: input, shape index: {}]   ;;  %s1150_s1 = inlined_call_operand.vmem [shape: f32[2,2,256], index: 1, kind: input, shape index: {}]   ;;  %s1151_s2 = inlined_call_operand.vmem [shape: f32[2,256], index: 2, kind: input, shape index: {}]   ;;  %s1152_s3 = inlined_call_operand.hbm [shape: f32[2,4,256], index: 3, kind: output, shape index: {}]  }
   0x1   :  { %10 = vsyncpa [#allocation3 + $0x1], 0  ;;  %s943_s12 = smov 0   ;;  %s945_s13 = smov 0  }
   0x2   :  { %s947_s14 = smov 0   ;;  %s949_s15 = smov 0  }
   0x3   :  { %s951_s16 = smov 0   ;;  %s953_s17 = smov 0  }
   0x4 LB: > { %s746_s18 = sadd.s32 4294967295, %s919_s17   ;;  %s747_s19 = sadd.s32 4294967294, %s919_s17   ;;  %s919_s17 = sphi %s953_s17, %s16_s17   ;;  %s915_s16 = sphi %s951_s16, %s1159_s16   ;;  %s911_s15 = sphi %s949_s15, %s1158_s15   ;;  %s907_s14 = sphi %s947_s14, %s1157_s14   ;;  %s903_s13 = sphi %s945_s13, %s1156_s13   ;;  %s899_s12 = sphi %s943_s12, %s1155_s12  }
   0x5   : > { %s28_s20 = sadd.s32 1, %s915_s16  ;;  %s117_s21 = sadd.s32 1, %s907_s14 }
   0x6   : > { %p30_p0 = scmp.ge.s32.totalorder %s28_s20, 2  ;;  %p127_p1 = scmp.ne.s32.totalorder %s907_s14, %s903_s13 }
   0x7   : > { %p128_p2 = scmp.eq.s32.totalorder %s746_s18, 1  ;;  %p133_p3 = scmp.ne.s32.totalorder %s903_s13, %s899_s12 }
   0x8   : > { %s1161_s20 = smov (%p30_p0, %s28_s20), 0  ;;  %p134_p5 = scmp.eq.s32.totalorder %s747_s19, 1 }
   0x9   : > { %p983_p4 = por %p128_p2, %p127_p1  ;;  %s112_s23 = ssub.s32 %s915_s16, %s1161_s20 }
   0xa   : > { %p751_p6 = scmp.ge.s32.totalorder %s919_s17, 1  ;;  %p115_p7 = scmp.eq.s32.totalorder %s112_s23, 0 }
   0xb   : > { %p990_p8 = por %p134_p5, %p133_p3  ;;  %p182_p9 = scmp.lt.s32.totalorder %s919_s17, 3 }
   0xc   : > { %s996_s25 = scalar_select %p115_p7, %s907_s14, %s117_s21  }
   0xd   : > { %p183_p10 = pnand %p751_p6, %p182_p9 }
   0xe   : > { %p220_p11 = scmp.lt.s32.totalorder (!%p183_p10), %s911_s15, 1  ;;  %v260_v0 = vlaneseq (!%p183_p10)  ;;  %v921_v1 = vmov (!%p183_p10), 0.0   ;;  %v242_v2 = vld [vmem:[%s1151_s2] ss:$2 sm:$0x3] (!%p183_p10)  ;;  %vm387_vm10 = vcmask (!%p183_p10), 130048  }
   0xf   : > { %186 = sbr.rel (%p183_p10) target bundleno = 315 (0x13b), region = 32  ;;  %476 = vmatprep.mubr.f32.mxu0 (!%p183_p10), %v921_v1  ;;  %500 = vmatprep.mubr.f32.mxu1 (!%p183_p10), %v921_v1  ;;  %v757_v3 = vld [vmem:[%s1151_s2 + $0x1] ss:$2 sm:$0x3] (!%p183_p10)  ;;  %s217_s18 = sand.u32 (!%p183_p10), 1, %s903_s13  }
  0x10   : > { %v1014_v4 = vshrl.u32 (!%p183_p10), %v260_v0, 7  ;;  %s752_s19 = sshll.u32 (!%p183_p10), %s217_s18, 3  ;;  %s774_s21 = sshll.u32 (!%p183_p10), %s911_s15, 7 }
  0x11   : > { %s219_s23 = scalar_lea.vmem (!%p183_p10), [#allocation2], %s752_s19  ;;  %s922_s4 = smov (!%p183_p10), [#allocation2]  }
  0x12   : > { %v1017_v10 = vsub.s32 (!%p183_p10), 1, %v1014_v4  ;;  %v265_v12 = vsub.s32 (!%p183_p10), 0, %v1014_v4  ;;  %v1023_v19 = vadd.s32 (!%p183_p10), 8, %v1014_v4  ;;  %s845_s5 = sshll.u32 (!%p183_p10), %s922_s4, 4  ;;  %s846_s5 = int_to_ptr.vmem [resolvable:$false] %s845_s5 }
  0x13   : > { %s847_s6 = scalar_lea.vmem (!%p183_p10), %s846_s5, 256 }
  0x16   : > { %s1002_s26 = scalar_select %p220_p11, %s911_s15, 1 }
  0x17   : > { %s627_s15 = scalar_lea.sflag [#allocation3], %s217_s18 }
  0x18   : > { %s773_s29 = sshll.u32 %s1002_s26, 2  ;;  %s772_s8 = sshll.u32 %s1002_s26, 6 }
  0x19   : > { %s233_s7 = scalar_lea.vmem %s1150_s1, %s773_s29  ;;  %s224_s11 = scalar_lea.vmem %s1149_s0, %s772_s8 }
  0x1a   : > { %v243_v5 = vld [vmem:[%s233_s7] ss:$2 sm:$0x3]  ;;  %v758_v6 = vld [vmem:[%s233_s7 + $0x1] ss:$2 sm:$0x3]  ;;  %s1102_s29 = scalar_lea.hbm %s1152_s3, %s774_s21 }
  0x1b   : > { %v244_v7 = vadd.f32 %v243_v5, %v242_v2  ;;  %v249_v8 = vadd.f32 %v758_v6, %v757_v3  ;;  %v379_v53 = vld [vmem:[%s224_s11] sm:$0xff]  ;;  %v380_v55 = vld [vmem:[%s224_s11 + $0x8] sm:$0xff]  ;;  %v381_v57 = vld [vmem:[%s224_s11 + $0x10] sm:$0xff]  ;;  %s643_s26 = sshll.u32 %s219_s23, 4  ;;  %s1104_s26 = int_to_ptr.vmem [resolvable:$true] %s643_s26 }
  0x1c   : > { %v383_v54 = vld [vmem:[%s224_s11 + $0x20] sm:$0xff]  ;;  %v384_v56 = vld [vmem:[%s224_s11 + $0x28] sm:$0xff]  ;;  %v385_v58 = vld [vmem:[%s224_s11 + $0x30] sm:$0xff]  ;;  %s841_s30 = scalar_lea.vmem %s1104_s26, 128  ;;  %p848_p1 = scmp.lt.s32.totalorder %s1104_s26, %s846_s5 }
  0x1d   : > { %v251_v9 = vfloor.f32 %v249_v8  ;;  %v250_v11 = vfloor.f32 %v244_v7  ;;  %v382_v59 = vld [vmem:[%s224_s11 + $0x18] sm:$0xff]  ;;  %p842_p12 = scmp.ne.s32.totalorder %s1104_s26, %s841_s30  ;;  %p849_p2 = scmp.lt.s32.totalorder %s847_s6, %s841_s30 }
  0x1e   : > { %v386_v60 = vld [vmem:[%s224_s11 + $0x38] sm:$0xff] }
  0x1f   : > { %v254_v13 = vsub.f32 %v249_v8, %v251_v9  ;;  %v783_v14 = vtrunc.f32 %v251_v9  ;;  %v1020_v15 = vsub.f32 %v244_v7, %v250_v11  ;;  %v781_v16 = vtrunc.f32 %v250_v11  ;;  %p843_p13 = pnand %p842_p12, %p983_p4  ;;  %p850_p3 = por %p849_p2, %p848_p1 }
  0x21   : > { %v255_v17 = vsub.f32 1.0, %v254_v13  ;;  %v784_v18 = vcvt.f32.s32 %v783_v14  ;;  %v310_v20 = vrot.slane %v254_v13, %v1017_v10  ;;  %v306_v21 = vrot.slane %v254_v13, %v265_v12  ;;  %p844_p0 = pneg %p843_p13 }
  0x22   : > { %v253_v22 = vsub.f32 1.0, %v1020_v15  ;;  %v1027_v23 = vcvt.f32.s32 %v781_v16  ;;  %v1030_v24 = vrot.slane %v1020_v15, %v265_v12  ;;  %v368_v3 = vrot.slane %v1020_v15, %v1017_v10 }
  0x23   : > { %v259_v25 = vadd.s32 1, %v784_v18  ;;  %v270_v26 = vrot.slane %v784_v18, %v1017_v10  ;;  %v283_v27 = vrot.slane %v255_v17, %v1017_v10  ;;  %v266_v28 = vrot.slane %v784_v18, %v265_v12  ;;  %p851_p5 = pnand %p850_p3, %p844_p0 }
  0x24   : > { %v279_v29 = vrot.slane %v255_v17, %v265_v12  ;;  %v1035_v30 = vadd.s32 1, %v1027_v23  ;;  %v1038_v31 = vrot.slane %v1027_v23, %v265_v12  ;;  %v337_v32 = vrot.slane %v253_v22, %v265_v12 }
  0x25   : > { %vm272_vm0 = vcmp.eq.s32.totalorder %v1014_v4, %v270_v26  ;;  %vm274_vm1 = vcmp.eq.s32.totalorder %v1023_v19, %v270_v26  ;;  %v297_v33 = vrot.slane %v259_v25, %v1017_v10  ;;  %vm271_vm2 = vcmp.eq.s32.totalorder %v1014_v4, %v266_v28 }
  0x26   : > { %v287_v34 = vsel %vm272_vm0, %v283_v27, 0.0  ;;  %v289_v35 = vsel %vm274_vm1, %v283_v27, 0.0  ;;  %vm273_vm3 = vcmp.eq.s32.totalorder %v1023_v19, %v266_v28  ;;  %v286_v36 = vsel %vm271_vm2, %v279_v29, 0.0 }
  0x27   : > { %vm299_vm4 = vcmp.eq.s32.totalorder %v1014_v4, %v297_v33  ;;  %vm301_vm5 = vcmp.eq.s32.totalorder %v1023_v19, %v297_v33  ;;  %v288_v37 = vsel %vm273_vm3, %v279_v29, 0.0  ;;  %v293_v38 = vrot.slane %v259_v25, %v265_v12 }
  0x28   : > { %v314_v39 = vsel %vm299_vm4, %v310_v20, 0.0  ;;  %v316_v40 = vsel %vm301_vm5, %v310_v20, 0.0  ;;  %vm329_vm6 = vcmp.eq.s32.totalorder %v1014_v4, %v1038_v31  ;;  %v351_v41 = vrot.slane %v1035_v30, %v265_v12 }
  0x29   : > { %v318_v42 = vadd.f32 %v314_v39, %v287_v34  ;;  %v320_v43 = vadd.f32 %v316_v40, %v289_v35  ;;  %vm298_vm7 = vcmp.eq.s32.totalorder %v1014_v4, %v293_v38  ;;  %vm300_vm8 = vcmp.eq.s32.totalorder %v1023_v19, %v293_v38 }
  0x2a   : > { %v313_v44 = vsel %vm298_vm7, %v306_v21, 0.0  ;;  %v315_v45 = vsel %vm300_vm8, %v306_v21, 0.0  ;;  %v344_v46 = vsel %vm329_vm6, %v337_v32, 0.0  ;;  %vm356_vm9 = vcmp.eq.s32.totalorder %v1014_v4, %v351_v41 }
  0x2b   : > { %v775_v47 = vpack.c.bf16 %v320_v43, %v318_v42  ;;  %v317_v48 = vadd.f32 %v313_v44, %v286_v36  ;;  %v319_v49 = vadd.f32 %v315_v45, %v288_v37  ;;  %v371_v50 = vsel %vm356_vm9, %v1030_v24, 0.0 }
  0x2c   : > { %v1060_v51 = vadd.f32 %v371_v50, %v344_v46  ;;  %vm331_vm11 = vcmp.eq.s32.totalorder %v1023_v19, %v1038_v31  ;;  %vm358_vm12 = vcmp.eq.s32.totalorder %v1023_v19, %v351_v41  ;;  %v328_v0 = vrot.slane %v1027_v23, %v1017_v10 }
  0x2d   : > { %776 = vmatprep.subr.bf16.mxu0 %v775_v47  ;;  %779 = vmatprep.subr.bf16.mxu1 %v775_v47  ;;  %v777_v52 = vpack.c.bf16 %v319_v49, %v317_v48  ;;  %v346_v61 = vsel %vm331_vm11, %v337_v32, 0.0  ;;  %v373_v62 = vsel %vm358_vm12, %v1030_v24, 0.0  ;;  %v341_v2 = vrot.slane %v253_v22, %v1017_v10 }
  0x2e   : > { %v377_v63 = vadd.f32 %v373_v62, %v346_v61  ;;  %vm330_vm13 = vcmp.eq.s32.totalorder %v1014_v4, %v328_v0  ;;  %vm332_vm15 = vcmp.eq.s32.totalorder %v1023_v19, %v328_v0  ;;  %vm610_vm1 = vcmask 1041409  }
  0x2f   : > { %778 = vmatpush1.bf16.msra.mxu0 %v777_v52  ;;  %780 = vmatpush1.bf16.msra.mxu1 %v777_v52  ;;  %v345_v5 = vsel %vm330_vm13, %v341_v2, 0.0  ;;  %v347_v8 = vsel %vm332_vm15, %v341_v2, 0.0  ;;  %vm612_vm2 = vcmask 1045509   ;;  %vm615_vm3 = vcmask 1042434  }
  0x30   : > { %vm617_vm4 = vcmask 1046534   ;;  %vm620_vm5 = vcmask 1043459   ;;  %vm622_vm6 = vcmask 1047559  }
  0x32   : > { %759 = vmatmul.mubr.msk.f32.vlgmr.msra.gmra.mrb[0].mxu0 %vm387_vm10, %v379_v53  ;;  %763 = vmatmul.mubr.msk.f32.vlgmr.msra.gmra.mrb[0].mxu1 %vm387_vm10, %v383_v54 }
  0x33   : > { %482 = vmatprep.mubr.f32.mxu0 %v921_v1  ;;  %506 = vmatprep.mubr.f32.mxu1 %v921_v1 }
  0x36   : > { %760 = vmatmul.mubr.msk.f32.gmra.mrb[2].mxu0 %vm387_vm10, %v380_v55  ;;  %764 = vmatmul.mubr.msk.f32.gmra.mrb[2].mxu1 %vm387_vm10, %v384_v56 }
  0x37   : > { %488 = vmatprep.mubr.f32.mxu0 %v921_v1  ;;  %512 = vmatprep.mubr.f32.mxu1 %v921_v1 }
  0x3a   : > { %761 = vmatmul.mubr.msk.f32.gmra.mrb[4].mxu0 %vm387_vm10, %v381_v57  ;;  %765 = vmatmul.mubr.msk.f32.gmra.mrb[4].mxu1 %vm387_vm10, %v385_v58 }
  0x3b   : > { %494 = vmatprep.mubr.f32.mxu0 %v921_v1  ;;  %518 = vmatprep.mubr.f32.mxu1 %v921_v1  ;;  %v355_v1 = vrot.slane %v1035_v30, %v1017_v10 }
  0x3d   : > { %vm357_vm14 = vcmp.eq.s32.totalorder %v1014_v4, %v355_v1  ;;  %vm359_vm0 = vcmp.eq.s32.totalorder %v1023_v19, %v355_v1 }
  0x3e   : > { %762 = vmatmul.mubr.msk.f32.gmra.mrb[6].mxu0 %vm387_vm10, %v382_v59  ;;  %766 = vmatmul.mubr.msk.f32.gmra.mrb[6].mxu1 %vm387_vm10, %v386_v60  ;;  %v372_v6 = vsel %vm357_vm14, %v368_v3, 0.0  ;;  %v374_v9 = vsel %vm359_vm0, %v368_v3, 0.0 }
  0x3f   : > { %v376_v7 = vadd.f32 %v372_v6, %v345_v5  ;;  %v378_v4 = vadd.f32 %v374_v9, %v347_v8 }
 0x105   : > { %v478_v11 = vpop.f32.mrb[0].mxu0  ;;  %v502_v12 = vpop.f32.mrb[0].mxu1 }
 0x106   : > { %v525_v13 = vmul.f32 %v478_v11, %v1060_v51  ;;  %v480_v14 = vpop.f32.mrb[1].mxu0  ;;  %v533_v10 = vmul.f32 %v502_v12, %v1060_v51  ;;  %v504_v15 = vpop.f32.mrb[1].mxu1 }
 0x107   : > { %v526_v16 = vmul.f32 %v480_v14, %v376_v7  ;;  %v534_v17 = vmul.f32 %v504_v15, %v376_v7 }
 0x109   : > { %v484_v18 = vpop.f32.mrb[2].mxu0  ;;  %v508_v20 = vpop.f32.mrb[2].mxu1 }
 0x10a   : > { %v527_v21 = vmul.f32 %v484_v18, %v377_v63  ;;  %v535_v22 = vmul.f32 %v508_v20, %v377_v63  ;;  %v486_v23 = vpop.f32.mrb[3].mxu0  ;;  %v510_v19 = vpop.f32.mrb[3].mxu1 }
 0x10b   : > { %v528_v24 = vmul.f32 %v486_v23, %v378_v4  ;;  %v536_v25 = vmul.f32 %v510_v19, %v378_v4 }
 0x10c   : > { %v541_v26 = vadd.f32 %v527_v21, %v525_v13  ;;  %v569_v27 = vadd.f32 %v535_v22, %v533_v10 }
 0x10d   : > { %v548_v28 = vadd.f32 %v528_v24, %v526_v16  ;;  %v576_v29 = vadd.f32 %v536_v25, %v534_v17  ;;  %v490_v30 = vpop.f32.mrb[4].mxu0  ;;  %v514_v31 = vpop.f32.mrb[4].mxu1 }
 0x10e   : > { %v542_v32 = vrot.slane %v541_v26, 4  ;;  %v570_v33 = vrot.slane %v569_v27, 4  ;;  %v529_v34 = vmul.f32 %v490_v30, %v1060_v51  ;;  %v492_v35 = vpop.f32.mrb[5].mxu0  ;;  %v537_v36 = vmul.f32 %v514_v31, %v1060_v51  ;;  %v516_v37 = vpop.f32.mrb[5].mxu1 }
 0x10f   : > { %v549_v38 = vrot.slane %v548_v28, 4  ;;  %v577_v39 = vrot.slane %v576_v29, 4  ;;  %v530_v40 = vmul.f32 %v492_v35, %v376_v7  ;;  %v538_v41 = vmul.f32 %v516_v37, %v376_v7 }
 0x110   : > { %v543_v42 = vadd.f32 %v542_v32, %v541_v26  ;;  %v571_v43 = vadd.f32 %v570_v33, %v569_v27 }
 0x111   : > { %v550_v44 = vadd.f32 %v549_v38, %v548_v28  ;;  %v578_v45 = vadd.f32 %v577_v39, %v576_v29  ;;  %v496_v46 = vpop.f32.mrb[6].mxu0  ;;  %v520_v47 = vpop.f32.mrb[6].mxu1 }
 0x112   : > { %v544_v48 = vrot.slane %v543_v42, 2  ;;  %v572_v49 = vrot.slane %v571_v43, 2  ;;  %v531_v50 = vmul.f32 %v496_v46, %v377_v63  ;;  %v539_v52 = vmul.f32 %v520_v47, %v377_v63  ;;  %v498_v53 = vpop.f32.mrb[7].mxu0  ;;  %v522_v54 = vpop.f32.mrb[7].mxu1 }
 0x113   : > { %v551_v55 = vrot.slane %v550_v44, 2  ;;  %v579_v56 = vrot.slane %v578_v45, 2  ;;  %v532_v51 = vmul.f32 %v498_v53, %v378_v4  ;;  %v540_v57 = vmul.f32 %v522_v54, %v378_v4 }
 0x114   : > { %v545_v58 = vadd.f32 %v544_v48, %v543_v42  ;;  %v573_v59 = vadd.f32 %v572_v49, %v571_v43  ;;  %v555_v60 = vadd.f32 %v531_v50, %v529_v34  ;;  %v583_v61 = vadd.f32 %v539_v52, %v537_v36 }
 0x115   : > { %v552_v62 = vadd.f32 %v551_v55, %v550_v44  ;;  %v580_v0 = vadd.f32 %v579_v56, %v578_v45  ;;  %v562_v1 = vadd.f32 %v532_v51, %v530_v40  ;;  %v590_v2 = vadd.f32 %v540_v57, %v538_v41 }
 0x116   : > { %v546_v3 = vrot.slane %v545_v58, 1  ;;  %v574_v5 = vrot.slane %v573_v59, 1  ;;  %v556_v6 = vrot.slane %v555_v60, 4  ;;  %v584_v7 = vrot.slane %v583_v61, 4 }
 0x117   : > { %v553_v8 = vrot.slane %v552_v62, 1  ;;  %v581_v63 = vrot.slane %v580_v0, 1  ;;  %v563_v9 = vrot.slane %v562_v1, 4  ;;  %v591_v11 = vrot.slane %v590_v2, 4 }
 0x118   : > { %v547_v12 = vadd.f32 %v546_v3, %v545_v58  ;;  %v575_v13 = vadd.f32 %v574_v5, %v573_v59  ;;  %v557_v14 = vadd.f32 %v556_v6, %v555_v60  ;;  %v585_v10 = vadd.f32 %v584_v7, %v583_v61 }
 0x119   : > { %v554_v15 = vadd.f32 %v553_v8, %v552_v62  ;;  %v582_v16 = vadd.f32 %v581_v63, %v580_v0  ;;  %v564_v17 = vadd.f32 %v563_v9, %v562_v1  ;;  %v592_v4 = vadd.f32 %v591_v11, %v590_v2 }
 0x11a   : > { %v558_v18 = vrot.slane %v557_v14, 2  ;;  %v586_v20 = vrot.slane %v585_v10, 2 }
 0x11b   : > { %v605_v21 = vcombine.low %v547_v12, %v554_v15  ;;  %v607_v22 = vcombine.low %v575_v13, %v582_v16  ;;  %v565_v23 = vrot.slane %v564_v17, 2  ;;  %v593_v19 = vrot.slane %v592_v4, 2 }
 0x11c   : > { %v559_v24 = vadd.f32 %v558_v18, %v557_v14  ;;  %v587_v25 = vadd.f32 %v586_v20, %v585_v10 }
 0x11d   : > { %v566_v26 = vadd.f32 %v565_v23, %v564_v17  ;;  %v594_v27 = vadd.f32 %v593_v19, %v592_v4  ;;  %v614_v39 = vrot.slane %v607_v22, 6 }
 0x11e   : > { %v560_v28 = vrot.slane %v559_v24, 1  ;;  %v588_v29 = vrot.slane %v587_v25, 1 }
 0x11f   : > { %v567_v30 = vrot.slane %v566_v26, 1  ;;  %v595_v31 = vrot.slane %v594_v27, 1 }
 0x120   : > { %v561_v32 = vadd.f32 %v560_v28, %v559_v24  ;;  %v589_v33 = vadd.f32 %v588_v29, %v587_v25 }
 0x121   : > { %v568_v34 = vadd.f32 %v567_v30, %v566_v26  ;;  %v596_v35 = vadd.f32 %v595_v31, %v594_v27 }
 0x123   : > { %v606_v36 = vcombine.low %v561_v32, %v568_v34  ;;  %v608_v37 = vcombine.low %v589_v33, %v596_v35 }
 0x125   : > { %v609_v38 = vrot.slane %v606_v36, 7  ;;  %v619_v43 = vrot.slane %v608_v37, 5 }
 0x127   : > { %v611_v40 = vsel %vm610_vm1, %v609_v38, %v605_v21 }
 0x128   : > { %v613_v41 = vsel %vm612_vm2, %v609_v38, %v611_v40 }
 0x129   : > { %v616_v42 = vsel %vm615_vm3, %v614_v39, %v613_v41 }
 0x12a   : > { %v618_v44 = vsel %vm617_vm4, %v614_v39, %v616_v42 }
 0x12b   : > { %v621_v45 = vsel %vm620_vm5, %v619_v43, %v618_v44 }
 0x12c   : > { %v623_v46 = vsel %vm622_vm6, %v619_v43, %v621_v45 }
 0x12d   : > { %625 = vst [vmem:[%s219_s23] sm:$0xff] %v623_v46 }
 0x12e   : > { %854 = shalt.err (!%p851_p5)
}
 0x12f   : > { %s855_s7 = scalar_lea.hbm %s1102_s29, 128  ;;  %s859_s10 = scalar_lea.hbm %s1152_s3, 256 }
 0x130   : > { %p856_p6 = scmp.ne.s32.totalorder %s1102_s29, %s855_s7  ;;  %p860_p10 = scmp.lt.u32.totalorder %s1102_s29, %s1152_s3 }
 0x131   : > { %p861_p11 = scmp.lt.u32.totalorder %s859_s10, %s855_s7  ;;  %p863_p13 = scmp.lt.u32.totalorder %s855_s7, %s1102_s29 }
 0x132   : > { %p857_p7 = pnand %p856_p6, %p983_p4 }
 0x133   : > { %p862_p12 = por %p861_p11, %p860_p10 }
 0x134   : > { %p858_p9 = pneg %p857_p7 }
 0x135   : > { %p864_p0 = por %p863_p13, %p862_p12 }
 0x137   : > { %p865_p1 = pnand %p864_p0, %p858_p9 }
 0x139   : > { %868 = shalt.err (!%p865_p1)
}
 0x13a   : > { %785 = dma.vmem_to_hbm [thread:$0]  (%p983_p4), %s1104_s26, 128, %s1102_s29, %s627_s15  }
 0x13b PF: > { %p791_p2 = scmp.ge.s32.totalorder %s919_s17, 2  ;;  %s655_s19 = sand.u32 1, %s899_s12  }
 0x13c   : > { %s656_s21 = scalar_lea.sflag [#allocation3], %s655_s19 }
 0x13d   : > { %p788_p3 = pnand %p791_p2, %p990_p8 }
 0x13f   : > { %894 = dma.done.wait (!%p788_p3), %s656_s21, 128  }
 0x140   : > { %896 = vsyncadd (!%p788_p3), %s656_s21, 4294967168  ;;  %s16_s17 = sadd.s32 1, %s919_s17   ;;  %s1155_s12 = smov %s903_s13 }
 0x141   : > { %p13_p5 = scmp.ge.s32.totalorder %s16_s17, 4   ;;  %s1156_s13 = smov %s907_s14 }
 0x142   : > { %s1157_s14 = smov %s996_s25  ;;  %s1158_s15 = smov %s915_s16 }
 0x143   : > { %s1159_s16 = smov %s1161_s20  ;;  %15 = sbr.rel (!%p13_p5) target bundleno = 4 (0x4), region = 75 }
 0x14a   :  { %661 = vsyncpa [#allocation3], 1 }
 0x14b   :  { %663 = vsyncpa [#allocation3 + $0x1], 1 }

</bundles_post_ra>
